<compile_context>
chip_gen: v7x
topology: tpu7x:2x2x1
jax: 0.10.0
libtpu: 0.0.40
codegen_flags: <defaults>
</compile_context>

<pallas_src>
import math

import jax
import jax.numpy as jnp
from jax.experimental import pallas as pl
from jax.experimental.pallas import tpu as pltpu


def _matmul_kernel(x_ref, w_ref, o_ref):
    """One (tile_m, K) @ (K, Cout_pad) MXU matmul per grid step, f32 accum."""
    o_ref[...] = jnp.dot(
        x_ref[...], w_ref[...], preferred_element_type=jnp.float32
    ).astype(o_ref.dtype)


def _round_up(x, m):
    return ((x + m - 1) // m) * m


def _im2col(x, kernel_size, stride, padding, dilation):
    """x: (N, D, H, W, Cin) channels-last -> (M, K) patches, plus (Dout, Hout, Wout).

    Channel order along K is (kd, kh, kw, cin) so it matches a weight reshaped
    from (KD, KH, KW, Cin, Cout) to (K, Cout).
    """
    N, D, H, W, Cin = x.shape
    KD, KH, KW = kernel_size
    sd, sh, sw = stride
    pd, ph, pw = padding
    dd, dh, dw = dilation

    if pd or ph or pw:
        x = jnp.pad(x, ((0, 0), (pd, pd), (ph, ph), (pw, pw), (0, 0)))
    Dp, Hp, Wp = D + 2 * pd, H + 2 * ph, W + 2 * pw

    Dout = (Dp - dd * (KD - 1) - 1) // sd + 1
    Hout = (Hp - dh * (KH - 1) - 1) // sh + 1
    Wout = (Wp - dw * (KW - 1) - 1) // sw + 1

    slices = []
    for kd in range(KD):
        for kh in range(KH):
            for kw in range(KW):
                d0, h0, w0 = kd * dd, kh * dh, kw * dw
                sl = x[:,
                       d0:d0 + (Dout - 1) * sd + 1:sd,
                       h0:h0 + (Hout - 1) * sh + 1:sh,
                       w0:w0 + (Wout - 1) * sw + 1:sw,
                       :]
                slices.append(sl)
    patches = jnp.concatenate(slices, axis=-1)  # (N, Dout, Hout, Wout, K)
    K = KD * KH * KW * Cin
    return patches.reshape(N * Dout * Hout * Wout, K), (Dout, Hout, Wout)


def conv3d_pallas(x_ncdhw, w_oidhw, bias=None,
                  stride=(1, 1, 1), padding=(0, 0, 0), dilation=(1, 1, 1),
                  groups=1, tile_m=128):
    """F.conv3d-compatible forward (groups must be 1)."""
    N, Cin, D, H, W = x_ncdhw.shape
    Cout, Cin_w, KD, KH, KW = w_oidhw.shape
    assert groups == 1 and Cin == Cin_w, "groups != 1 not supported"
    # TODO(synk): grouped convolution (groups > 1) is not implemented.

    # Channels-last, then im2col in the wrapper so the kernel-side contraction
    # dim is K = KD*KH*KW*Cin (deep MXU contraction instead of Cin=3).
    x = jnp.transpose(x_ncdhw, (0, 2, 3, 4, 1))                  # (N, D, H, W, Cin)
    patches, (Dout, Hout, Wout) = _im2col(
        x, (KD, KH, KW), stride, padding, dilation)
    M, K = patches.shape

    # Weight -> (K, Cout) with matching (kd, kh, kw, cin) ordering.
    w = jnp.transpose(w_oidhw, (2, 3, 4, 1, 0)).reshape(K, Cout)

    # Lane-dense output: zero-pad Cout up to a multiple of 128 (sliced off below).
    Np = _round_up(Cout, 128)
    if Np != Cout:
        w = jnp.pad(w, ((0, 0), (0, Np - Cout)))

    # Pad M (rows) to a multiple of the M tile; padded rows are zeros.
    tm = min(tile_m, _round_up(M, 8))
    Mp = _round_up(M, tm)
    if Mp != M:
        patches = jnp.pad(patches, ((0, Mp - M), (0, 0)))

    out = pl.pallas_call(
        _matmul_kernel,
        out_shape=jax.ShapeDtypeStruct((Mp, Np), x.dtype),
        grid=(Mp // tm,),
        in_specs=[
            # Per-step row tile of the patch matrix.
            pl.BlockSpec((tm, K), lambda i: (i, 0)),
            # Full weight matrix; constant block index -> resident in VMEM.
            pl.BlockSpec((K, Np), lambda i: (0, 0)),
        ],
        out_specs=pl.BlockSpec((tm, Np), lambda i: (i, 0)),
        compiler_params=pltpu.CompilerParams(
            dimension_semantics=("parallel",)),
    )(patches, w)

    out = out[:M, :Cout].reshape(N, Dout, Hout, Wout, Cout)
    out = jnp.transpose(out, (0, 4, 1, 2, 3))                    # back to NCDHW
    if bias is not None:
        out = out + bias.reshape(1, Cout, 1, 1, 1)
    return out


if __name__ == "__main__":
    # Module hyper-parameters (from the PyTorch Model).
    in_channels = 3
    out_channels = 64
    kernel_size = (3, 5, 7)

    # Small asymmetric input, NCDHW.
    N, D, H, W = 2, 8, 10, 12

    key = jax.random.PRNGKey(0)
    kx, kw = jax.random.split(key)

    x = jax.random.normal(kx, (N, in_channels, D, H, W), dtype=jnp.float32)

    # kaiming_uniform_(a=sqrt(5))-style init: U(-b, b), b = 1/sqrt(fan_in).
    fan_in = in_channels * kernel_size[0] * kernel_size[1] * kernel_size[2]
    bound = 1.0 / math.sqrt(fan_in)
    weight = jax.random.uniform(
        kw, (out_channels, in_channels) + kernel_size,
        minval=-bound, maxval=bound, dtype=jnp.float32)

    conv = jax.jit(lambda a, b: conv3d_pallas(a, b))
    out = jax.block_until_ready(conv(x, weight))

    # Cross-check against XLA's conv (same semantics as F.conv3d with defaults).
    ref = jax.lax.conv_general_dilated(
        x, weight, window_strides=(1, 1, 1), padding="VALID",
        dimension_numbers=("NCDHW", "OIDHW", "NCDHW"))
    ref = jax.block_until_ready(ref)

    assert out.shape == ref.shape, (out.shape, ref.shape)
    max_err = float(jnp.max(jnp.abs(out - ref)))
    assert jnp.allclose(out, ref, atol=2e-3, rtol=2e-3), max_err

    print("KERNEL_OK")
</pallas_src>

<mosaic_0001>
module attributes {stable_mosaic.version = 11 : i64} {
  func.func @_matmul_kernel(%arg0: i32, %arg1: memref<128x315xf32, #tpu.memory_space<vmem>>, %arg2: memref<315x128xf32, #tpu.memory_space<vmem>>, %arg3: memref<128x128xf32, #tpu.memory_space<vmem>>) attributes {dimension_semantics = [#tpu.dimension_semantics<parallel>], iteration_bounds = array<i64: 4>, scalar_prefetch = 0 : i64, scratch_operands = 0 : i64, tpu.core_type = #tpu.core_type<tc>, window_params = [{transform_indices = @transform_0, window_bounds = array<i64: 128, 315>}, {pipeline_mode = #tpu.pipeline_mode<synchronous>, transform_indices = @transform_1, window_bounds = array<i64: 315, 128>}, {transform_indices = @transform_2, window_bounds = array<i64: 128, 128>}]} {
    %c0 = arith.constant 0 : index
    %c0_0 = arith.constant 0 : index
    %0 = vector.load %arg1[%c0, %c0_0] : memref<128x315xf32, #tpu.memory_space<vmem>>, vector<128x315xf32>
    %c0_1 = arith.constant 0 : index
    %c0_2 = arith.constant 0 : index
    %1 = vector.load %arg2[%c0_1, %c0_2] : memref<315x128xf32, #tpu.memory_space<vmem>>, vector<315x128xf32>
    %cst = arith.constant dense<0.000000e+00> : vector<128x128xf32>
    %2 = tpu.matmul %0, %1, %cst {dimension_numbers = #tpu.dot_dimension_numbers<[1], [0], [0], [1], [0, 0, 1, 1], [], []>} : vector<128x315xf32>, vector<315x128xf32>, vector<128x128xf32> -> vector<128x128xf32>
    %c0_3 = arith.constant 0 : index
    %c0_4 = arith.constant 0 : index
    %3 = vector.load %arg3[%c0_3, %c0_4] : memref<128x128xf32, #tpu.memory_space<vmem>>, vector<128x128xf32>
    tpu.vector_store %arg3[%c0_3, %c0_4], %2 {strides = array<i32>} : memref<128x128xf32, #tpu.memory_space<vmem>>, vector<128x128xf32>,
    return
  }
  func.func @transform_0(%arg0: i32) -> (i32, i32) {
    %c0_i32 = arith.constant 0 : i32
    %c0_i32_0 = arith.constant 0 : i32
    return %arg0, %c0_i32 : i32, i32
  }
  func.func @transform_1(%arg0: i32) -> (i32, i32) {
    %c0_i32 = arith.constant 0 : i32
    %c0_i32_0 = arith.constant 0 : i32
    %c0_i32_1 = arith.constant 0 : i32
    return %c0_i32, %c0_i32_0 : i32, i32
  }
  func.func @transform_2(%arg0: i32) -> (i32, i32) {
    %c0_i32 = arith.constant 0 : i32
    %c0_i32_0 = arith.constant 0 : i32
    return %arg0, %c0_i32 : i32, i32
  }
}

</mosaic_0001>

<bundles_post_ra>
// kernel: _lambda_.1
= control target key start
LH: loop header
LB: loop body
LE: loop exit
PB: predicated region body
PF: predicated region fallthrough
CT: control target
= control target key end

     0   :  { %s925_s9 = smov 0   ;;  %s1162_s0 = inlined_call_operand.vmem [shape: f32[512,315], index: 0, kind: input, shape index: {}]   ;;  %s1163_s1 = inlined_call_operand.vmem [shape: f32[315,128], index: 1, kind: input, shape index: {}]   ;;  %s1164_s2 = inlined_call_operand.vmem [shape: f32[512,128], index: 2, kind: output, shape index: {}]  }
   0x1 LB: > { %s653_s10 = sadd.s32 4294967295, %s907_s9   ;;  %p657_p0 = scmp.ge.s32.totalorder %s907_s9, 1  ;;  %s907_s9 = sphi %s925_s9, %s12_s9  }
   0x2   : > { %p114_p1 = scmp.lt.s32.totalorder %s907_s9, 5 }
   0x4   : > { %p115_p2 = pnand %p657_p0, %p114_p1 }
   0x5   : > { %v214_v0 = vld [vmem:[%s1163_s1 + $0x80] sm:$0xff] (!%p115_p2)  ;;  %v215_v1 = vld [vmem:[%s1163_s1 + $0x88] sm:$0xff] (!%p115_p2)  ;;  %s658_s17 = sshll.u32 (!%p115_p2), %s653_s10, 4  ;;  %v216_v5 = vld [vmem:[%s1163_s1 + $0x90] sm:$0xff] (!%p115_p2)  ;;  %vm287_vm0 = vcmask (!%p115_p2), 1042432   ;;  %vm909_vm1 = vmmov (!%p115_p2), 1  }
   0x6   : > { %118 = sbr.rel (%p115_p2) target bundleno = 302 (0x12e), region = 28  ;;  %v198_v2 = vld [vmem:[%s1163_s1] sm:$0xff] (!%p115_p2)  ;;  %v825_v3 = vpack.c.bf16 (!%p115_p2), %v215_v1, %v214_v0  ;;  %v199_v4 = vld [vmem:[%s1163_s1 + $0x8] sm:$0xff] (!%p115_p2)  ;;  %v217_v6 = vld [vmem:[%s1163_s1 + $0x98] sm:$0xff] (!%p115_p2)  ;;  %p138_p3 = scmp.lt.s32.totalorder (!%p115_p2), %s658_s17, 63  ;;  %vm238_vm3 = vcmask (!%p115_p2), 482304  }
   0x7   : > { %v827_v7 = vpack.c.bf16 (!%p115_p2), %v199_v4, %v198_v2  ;;  %v829_v8 = vpack.c.bf16 (!%p115_p2), %v217_v6, %v216_v5  ;;  %v200_v9 = vld [vmem:[%s1163_s1 + $0x10] sm:$0xff] (!%p115_p2)  ;;  %v201_v10 = vld [vmem:[%s1163_s1 + $0x18] sm:$0xff] (!%p115_p2)  ;;  %v218_v11 = vld [vmem:[%s1163_s1 + $0xa0] sm:$0xff] (!%p115_p2) }
   0x8   : > { %826 = vmatprep.subr.bf16.mxu0 (!%p115_p2), %v825_v3  ;;  %875 = vmatprep.subr.bf16.mxu1 (!%p115_p2), %v825_v3  ;;  %v219_v12 = vld [vmem:[%s1163_s1 + $0xa8] sm:$0xff] (!%p115_p2)  ;;  %v831_v13 = vpack.c.bf16 (!%p115_p2), %v201_v10, %v200_v9  ;;  %v202_v15 = vld [vmem:[%s1163_s1 + $0x20] sm:$0xff] (!%p115_p2)  ;;  %v220_v17 = vld [vmem:[%s1163_s1 + $0xb0] sm:$0xff] (!%p115_p2) }
   0x9   : > { %828 = vmatpush3.bf16.msra.mxu0 (!%p115_p2), %v827_v7  ;;  %883 = vmatpush3.bf16.msra.mxu1 (!%p115_p2), %v827_v7  ;;  %v833_v14 = vpack.c.bf16 (!%p115_p2), %v219_v12, %v218_v11  ;;  %v203_v16 = vld [vmem:[%s1163_s1 + $0x28] sm:$0xff] (!%p115_p2)  ;;  %v221_v18 = vld [vmem:[%s1163_s1 + $0xb8] sm:$0xff] (!%p115_p2)  ;;  %v204_v21 = vld [vmem:[%s1163_s1 + $0x30] sm:$0xff] (!%p115_p2) }
   0xa   : > { %830 = vmatprep.subr.bf16.mxu0 (!%p115_p2), %v829_v8  ;;  %876 = vmatprep.subr.bf16.mxu1 (!%p115_p2), %v829_v8  ;;  %v835_v19 = vpack.c.bf16 (!%p115_p2), %v203_v16, %v202_v15  ;;  %v837_v20 = vpack.c.bf16 (!%p115_p2), %v221_v18, %v220_v17  ;;  %v205_v22 = vld [vmem:[%s1163_s1 + $0x38] sm:$0xff] (!%p115_p2)  ;;  %v222_v23 = vld [vmem:[%s1163_s1 + $0xc0] sm:$0xff] (!%p115_p2)  ;;  %v223_v24 = vld [vmem:[%s1163_s1 + $0xc8] sm:$0xff] (!%p115_p2) }
   0xb   : > { %v839_v27 = vpack.c.bf16 (!%p115_p2), %v205_v22, %v204_v21  ;;  %v841_v28 = vpack.c.bf16 (!%p115_p2), %v223_v24, %v222_v23  ;;  %v206_v29 = vld [vmem:[%s1163_s1 + $0x40] sm:$0xff] (!%p115_p2)  ;;  %v207_v30 = vld [vmem:[%s1163_s1 + $0x48] sm:$0xff] (!%p115_p2)  ;;  %v224_v31 = vld [vmem:[%s1163_s1 + $0xd0] sm:$0xff] (!%p115_p2) }
   0xc   : > { %v225_v32 = vld [vmem:[%s1163_s1 + $0xd8] sm:$0xff] (!%p115_p2)  ;;  %v843_v33 = vpack.c.bf16 (!%p115_p2), %v207_v30, %v206_v29  ;;  %v208_v35 = vld [vmem:[%s1163_s1 + $0x50] sm:$0xff] (!%p115_p2)  ;;  %v226_v37 = vld [vmem:[%s1163_s1 + $0xe0] sm:$0xff] (!%p115_p2) }
   0xd   : > { %s1166_s17 = smov (!%p138_p3, %s658_s17), 63  ;;  %832 = vmatpush3.bf16.msra.mxu0 %v831_v13  ;;  %884 = vmatpush3.bf16.msra.mxu1 %v831_v13  ;;  %v845_v34 = vpack.c.bf16 %v225_v32, %v224_v31  ;;  %v209_v36 = vld [vmem:[%s1163_s1 + $0x58] sm:$0xff]  ;;  %v227_v38 = vld [vmem:[%s1163_s1 + $0xe8] sm:$0xff]  ;;  %v210_v41 = vld [vmem:[%s1163_s1 + $0x60] sm:$0xff] }
   0xe   : > { %s891_s8 = smul.u32 24, %s1166_s17  ;;  %834 = vmatprep.subr.bf16.mxu0 %v833_v14  ;;  %877 = vmatprep.subr.bf16.mxu1 %v833_v14  ;;  %v847_v39 = vpack.c.bf16 %v209_v36, %v208_v35  ;;  %v849_v40 = vpack.c.bf16 %v227_v38, %v226_v37  ;;  %v211_v42 = vld [vmem:[%s1163_s1 + $0x68] sm:$0xff]  ;;  %v228_v43 = vld [vmem:[%s1163_s1 + $0xf0] sm:$0xff]  ;;  %v229_v44 = vld [vmem:[%s1163_s1 + $0xf8] sm:$0xff] }
   0xf   : > { %v851_v45 = vpack.c.bf16 %v211_v42, %v210_v41  ;;  %v853_v46 = vpack.c.bf16 %v229_v44, %v228_v43  ;;  %v212_v47 = vld [vmem:[%s1163_s1 + $0x70] sm:$0xff]  ;;  %v213_v48 = vld [vmem:[%s1163_s1 + $0x78] sm:$0xff]  ;;  %v230_v49 = vld [vmem:[%s1163_s1 + $0x100] sm:$0xff] }
  0x10   : > { %s981_s16 = scalar_lea.vmem %s1162_s0, %s891_s8  ;;  %v231_v50 = vld [vmem:[%s1163_s1 + $0x108] sm:$0xff]  ;;  %v855_v51 = vpack.c.bf16 %v213_v48, %v212_v47  ;;  %v232_v53 = vld [vmem:[%s1163_s1 + $0x110] sm:$0xff]  ;;  %v233_v54 = vld [vmem:[%s1163_s1 + $0x118] sm:$0xff] }
  0x11   : > { %v151_v25 = vld [vmem:[%s981_s16 + $0x8] sm:$0xff]  ;;  %836 = vmatpush3.bf16.msra.mxu0 %v835_v19  ;;  %885 = vmatpush3.bf16.msra.mxu1 %v835_v19  ;;  %v857_v52 = vpack.c.bf16 %v231_v50, %v230_v49  ;;  %v150_v55 = vld [vmem:[%s981_s16] sm:$0xff]  ;;  %v861_v58 = vpack.c.bf16 %v233_v54, %v232_v53  ;;  %v153_v62 = vld [vmem:[%s981_s16 + $0x18] sm:$0xff] }
  0x12   : > { %355 = vmatprep.mubr.f32.mxu0 %v151_v25  ;;  %v187_v26 = vld [vmem:[%s981_s16 + $0x128] sm:$0xff]  ;;  %838 = vmatprep.subr.bf16.mxu0 %v837_v20  ;;  %v186_v56 = vld [vmem:[%s981_s16 + $0x120] sm:$0xff]  ;;  %v189_v63 = vld [vmem:[%s981_s16 + $0x138] sm:$0xff] }
  0x13   : > { %878 = vmatprep.subr.bf16.mxu1 %v837_v20  ;;  %415 = vmatprep.mubr.f32.mxu1 %v187_v26  ;;  %v154_v57 = vld [vmem:[%s981_s16 + $0x20] sm:$0xff]  ;;  %v235_v61 = vld [vmem:[%s1163_s1 + $0x128] sm:$0xff]  ;;  %v157_v0 = vld [vmem:[%s981_s16 + $0x38] sm:$0xff] }
  0x14   : > { %v190_v59 = vld [vmem:[%s981_s16 + $0x140] sm:$0xff]  ;;  %v193_v2 = vld [vmem:[%s981_s16 + $0x158] sm:$0xff]  ;;  %v236_v3 = vld [vmem:[%s1163_s1 + $0x130] sm:$0xff] }
  0x15   : > { %840 = vmatpush3.bf16.msra.mxu0 %v839_v27  ;;  %886 = vmatpush3.bf16.msra.mxu1 %v839_v27  ;;  %v234_v60 = vld [vmem:[%s1163_s1 + $0x120] sm:$0xff]  ;;  %v237_v4 = vld [vmem:[%s1163_s1 + $0x138] sm:$0x7]  ;;  %v156_v5 = vld [vmem:[%s981_s16 + $0x30] sm:$0xff] }
  0x16   : > { %842 = vmatprep.subr.bf16.mxu0 %v841_v28  ;;  %879 = vmatprep.subr.bf16.mxu1 %v841_v28  ;;  %v865_v1 = vpack.c.bf16 %v235_v61, %v234_v60  ;;  %v192_v6 = vld [vmem:[%s981_s16 + $0x150] sm:$0xff]  ;;  %v869_v8 = vpack.c.bf16 %v237_v4, %v236_v3  ;;  %vm870_vm2 = vmpackc.low %vm287_vm0, %vm909_vm1  ;;  %v159_v10 = vld [vmem:[%s981_s16 + $0x48] sm:$0xff] }
  0x17   : > { %v160_v7 = vld [vmem:[%s981_s16 + $0x50] sm:$0xff]  ;;  %v195_v11 = vld [vmem:[%s981_s16 + $0x168] sm:$0xff]  ;;  %v162_v14 = vld [vmem:[%s981_s16 + $0x60] sm:$0xff] }
  0x18   : > { %v196_v9 = vld [vmem:[%s981_s16 + $0x170] sm:$0xff]  ;;  %v163_v12 = vld [vmem:[%s981_s16 + $0x68] sm:$0xff]  ;;  %v166_v16 = vld [vmem:[%s981_s16 + $0x80] sm:$0xff] }
  0x19   : > { %844 = vmatpush3.bf16.msra.mxu0 %v843_v33  ;;  %887 = vmatpush3.bf16.msra.mxu1 %v843_v33  ;;  %v152_v13 = vld [vmem:[%s981_s16 + $0x10] sm:$0xff]  ;;  %v155_v15 = vld [vmem:[%s981_s16 + $0x28] sm:$0xff]  ;;  %v158_v17 = vld [vmem:[%s981_s16 + $0x40] sm:$0xff] }
  0x1a   : > { %846 = vmatprep.subr.bf16.mxu0 %v845_v34  ;;  %880 = vmatprep.subr.bf16.mxu1 %v845_v34  ;;  %v165_v18 = vld [vmem:[%s981_s16 + $0x78] sm:$0xff]  ;;  %v164_v21 = vld [vmem:[%s981_s16 + $0x70] sm:$0xff]  ;;  %v167_v23 = vld [vmem:[%s981_s16 + $0x88] sm:$0xff] }
  0x1b   : > { %v161_v19 = vld [vmem:[%s981_s16 + $0x58] sm:$0xff]  ;;  %v168_v22 = vld [vmem:[%s981_s16 + $0x90] sm:$0xff]  ;;  %v170_v25 = vld [vmem:[%s981_s16 + $0xa0] sm:$0xff] }
  0x1c   : > { %v169_v20 = vld [vmem:[%s981_s16 + $0x98] sm:$0xff]  ;;  %v172_v24 = vld [vmem:[%s981_s16 + $0xb0] sm:$0xff]  ;;  %v171_v26 = vld [vmem:[%s981_s16 + $0xa8] sm:$0xff] }
  0x1d   : > { %848 = vmatpush3.bf16.msra.mxu0 %v847_v39  ;;  %888 = vmatpush3.bf16.msra.mxu1 %v847_v39  ;;  %v173_v27 = vld [vmem:[%s981_s16 + $0xb8] sm:$0xff]  ;;  %v175_v28 = vld [vmem:[%s981_s16 + $0xc8] sm:$0xff]  ;;  %v176_v29 = vld [vmem:[%s981_s16 + $0xd0] sm:$0xff] }
  0x1e   : > { %850 = vmatprep.subr.bf16.mxu0 %v849_v40  ;;  %881 = vmatprep.subr.bf16.mxu1 %v849_v40  ;;  %v174_v30 = vld [vmem:[%s981_s16 + $0xc0] sm:$0xff]  ;;  %v179_v31 = vld [vmem:[%s981_s16 + $0xe8] sm:$0xff]  ;;  %v177_v34 = vld [vmem:[%s981_s16 + $0xd8] sm:$0xff] }
  0x1f   : > { %v178_v32 = vld [vmem:[%s981_s16 + $0xe0] sm:$0xff]  ;;  %v185_v35 = vld [vmem:[%s981_s16 + $0x118] sm:$0xff]  ;;  %v188_v37 = vld [vmem:[%s981_s16 + $0x130] sm:$0xff] }
  0x20   : > { %v182_v33 = vld [vmem:[%s981_s16 + $0x100] sm:$0xff]  ;;  %v181_v36 = vld [vmem:[%s981_s16 + $0xf8] sm:$0xff]  ;;  %v180_v38 = vld [vmem:[%s981_s16 + $0xf0] sm:$0xff] }
  0x21   : > { %852 = vmatpush3.bf16.msra.mxu0 %v851_v45  ;;  %889 = vmatpush3.bf16.msra.mxu1 %v851_v45  ;;  %v191_v39 = vld [vmem:[%s981_s16 + $0x148] sm:$0xff]  ;;  %v184_v40 = vld [vmem:[%s981_s16 + $0x110] sm:$0xff]  ;;  %v194_v41 = vld [vmem:[%s981_s16 + $0x160] sm:$0xff] }
  0x22   : > { %854 = vmatprep.subr.bf16.mxu0 %v853_v46  ;;  %882 = vmatprep.subr.bf16.mxu1 %v853_v46  ;;  %v183_v42 = vld [vmem:[%s981_s16 + $0x108] sm:$0xff]  ;;  %v197_v43 = vld [vmem:[%s981_s16 + $0x178] sm:$0xff]  ;;  %s661_s16 = sshll.u32 %s1166_s17, 3 }
  0x23   : > { %s1137_s22 = scalar_lea.vmem %s1164_s2, %s661_s16 }
  0x25   : > { %856 = vmatpush3.bf16.msra.mxu0 %v855_v51  ;;  %890 = vmatpush3.bf16.msra.mxu1 %v855_v51 }
  0x26   : > { %858 = vmatprep.subr.bf16.mxu1 %v857_v52 }
  0x28   : > { %356 = vmatmul.mubr.f32.vlgmr.msra.gmra.mrb[0].mxu0 %v150_v55  ;;  %416 = vmatmul.mubr.f32.vlgmr.msra.gmra.mrb[0].mxu1 %v186_v56 }
  0x29   : > { %860 = vmatpush3.bf16.msra.mxu1 %v857_v52  ;;  %360 = vmatprep.mubr.f32.mxu0 %v154_v57 }
  0x2a   : > { %420 = vmatprep.mubr.f32.mxu1 %v190_v59  ;;  %862 = vmatprep.subr.bf16.mxu1 %v861_v58 }
  0x2c   : > { %361 = vmatmul.mubr.f32.gmra.mrb[2].mxu0 %v153_v62  ;;  %421 = vmatmul.mubr.f32.gmra.mrb[2].mxu1 %v189_v63 }
  0x2d   : > { %864 = vmatpush3.bf16.msra.mxu1 %v861_v58  ;;  %365 = vmatprep.mubr.f32.mxu0 %v157_v0 }
  0x2e   : > { %425 = vmatprep.mubr.f32.mxu1 %v193_v2  ;;  %866 = vmatprep.subr.bf16.mxu1 %v865_v1 }
  0x30   : > { %366 = vmatmul.mubr.f32.gmra.mrb[4].mxu0 %v156_v5  ;;  %426 = vmatmul.mubr.f32.gmra.mrb[4].mxu1 %v192_v6 }
  0x31   : > { %868 = vmatpush3.bf16.msra.mxu1 %v865_v1  ;;  %370 = vmatprep.mubr.f32.mxu0 %v160_v7 }
  0x32   : > { %430 = vmatprep.mubr.f32.mxu1 %v196_v9  ;;  %871 = vmatprep.subr.msk.bf16.mxu1 %vm870_vm2, %v869_v8 }
  0x34   : > { %371 = vmatmul.mubr.f32.gmra.mrb[6].mxu0 %v159_v10  ;;  %431 = vmatmul.mubr.f32.gmra.mrb[6].mxu1 %v195_v11 }
  0x35   : > { %874 = vmatpush3.bf16.msk.msra.mxu1 %vm870_vm2, %v869_v8  ;;  %375 = vmatprep.mubr.f32.mxu0 %v163_v12 }
  0x36   : > { %801 = vmatprep.mubr.msk.f32.mxu1 %vm238_vm3, %v152_v13 }
  0x38   : > { %376 = vmatmul.mubr.f32.gmra.mrb[8].mxu0 %v162_v14  ;;  %802 = vmatmul.mubr.msk.f32.vlgmr.msra.gmra.mrb[8].mxu1 %vm238_vm3, %v155_v15 }
  0x39   : > { %380 = vmatprep.mubr.f32.mxu0 %v166_v16  ;;  %804 = vmatprep.mubr.msk.f32.mxu1 %vm238_vm3, %v158_v17 }
  0x3c   : > { %381 = vmatmul.mubr.f32.gmra.mrb[10].mxu0 %v165_v18  ;;  %805 = vmatmul.mubr.msk.f32.gmra.mrb[10].mxu1 %vm238_vm3, %v161_v19 }
  0x3d   : > { %385 = vmatprep.mubr.f32.mxu0 %v169_v20  ;;  %807 = vmatprep.mubr.msk.f32.mxu1 %vm238_vm3, %v164_v21 }
  0x40   : > { %386 = vmatmul.mubr.f32.gmra.mrb[12].mxu0 %v168_v22  ;;  %808 = vmatmul.mubr.msk.f32.gmra.mrb[12].mxu1 %vm238_vm3, %v167_v23 }
  0x41   : > { %390 = vmatprep.mubr.f32.mxu0 %v172_v24  ;;  %810 = vmatprep.mubr.msk.f32.mxu1 %vm238_vm3, %v170_v25 }
  0x44   : > { %391 = vmatmul.mubr.f32.gmra.mrb[14].mxu0 %v171_v26  ;;  %811 = vmatmul.mubr.msk.f32.gmra.mrb[14].mxu1 %vm238_vm3, %v173_v27 }
  0x45   : > { %395 = vmatprep.mubr.f32.mxu0 %v175_v28  ;;  %813 = vmatprep.mubr.msk.f32.mxu1 %vm238_vm3, %v176_v29 }
  0x48   : > { %396 = vmatmul.mubr.f32.gmra.mrb[16].mxu0 %v174_v30  ;;  %814 = vmatmul.mubr.msk.f32.gmra.mrb[16].mxu1 %vm238_vm3, %v179_v31 }
  0x49   : > { %400 = vmatprep.mubr.f32.mxu0 %v178_v32  ;;  %816 = vmatprep.mubr.msk.f32.mxu1 %vm238_vm3, %v182_v33 }
  0x4c   : > { %401 = vmatmul.mubr.f32.gmra.mrb[18].mxu0 %v177_v34  ;;  %817 = vmatmul.mubr.msk.f32.gmra.mrb[18].mxu1 %vm238_vm3, %v185_v35 }
  0x4d   : > { %405 = vmatprep.mubr.f32.mxu0 %v181_v36  ;;  %819 = vmatprep.mubr.msk.f32.mxu1 %vm238_vm3, %v188_v37 }
  0x50   : > { %406 = vmatmul.mubr.f32.gmra.mrb[20].mxu0 %v180_v38  ;;  %820 = vmatmul.mubr.msk.f32.gmra.mrb[20].mxu1 %vm238_vm3, %v191_v39 }
  0x51   : > { %410 = vmatprep.mubr.f32.mxu0 %v184_v40  ;;  %822 = vmatprep.mubr.msk.f32.mxu1 %vm238_vm3, %v194_v41 }
  0x54   : > { %411 = vmatmul.mubr.f32.gmra.mrb[22].mxu0 %v183_v42  ;;  %823 = vmatmul.mubr.msk.f32.gmra.mrb[22].mxu1 %vm238_vm3, %v197_v43 }
  0xfb   : > { %v713_v44 = vpop.f32.mrb[0].mxu0  ;;  %v749_v45 = vpop.f32.mrb[0].mxu1 }
  0xfc   : > { %v714_v46 = vpop.f32.mrb[1].mxu0  ;;  %v750_v47 = vpop.f32.mrb[1].mxu1 }
  0xfd   : > { %v715_v48 = vadd.f32 %v714_v46, %v713_v44  ;;  %v1125_v49 = vadd.f32 %v750_v47, %v749_v45 }
  0xff   : > { %v716_v50 = vpop.f32.mrb[2].mxu0  ;;  %v752_v51 = vpop.f32.mrb[2].mxu1 }
 0x100   : > { %v717_v52 = vpop.f32.mrb[3].mxu0  ;;  %v753_v53 = vpop.f32.mrb[3].mxu1 }
 0x101   : > { %v718_v54 = vadd.f32 %v717_v52, %v716_v50  ;;  %v1127_v55 = vadd.f32 %v753_v53, %v752_v51 }
 0x103   : > { %v719_v56 = vpop.f32.mrb[4].mxu0  ;;  %v755_v57 = vpop.f32.mrb[4].mxu1 }
 0x104   : > { %v720_v58 = vpop.f32.mrb[5].mxu0  ;;  %v756_v59 = vpop.f32.mrb[5].mxu1 }
 0x105   : > { %v721_v60 = vadd.f32 %v720_v58, %v719_v56  ;;  %v1129_v61 = vadd.f32 %v756_v59, %v755_v57 }
 0x107   : > { %v722_v62 = vpop.f32.mrb[6].mxu0  ;;  %v758_v63 = vpop.f32.mrb[6].mxu1 }
 0x108   : > { %v723_v0 = vpop.f32.mrb[7].mxu0  ;;  %v759_v1 = vpop.f32.mrb[7].mxu1 }
 0x109   : > { %v724_v2 = vadd.f32 %v723_v0, %v722_v62  ;;  %v1132_v3 = vadd.f32 %v759_v1, %v758_v63 }
 0x10b   : > { %v725_v4 = vpop.f32.mrb[8].mxu0  ;;  %v803_v5 = vpop.f32.mrb[8].mxu1 }
 0x10c   : > { %v508_v6 = vadd.f32 %v803_v5, %v718_v54  ;;  %v726_v7 = vpop.f32.mrb[9].mxu0  ;;  %v502_v8 = vpop.f32.mrb[9].mxu1 }
 0x10d   : > { %v727_v9 = vadd.f32 %v726_v7, %v725_v4  ;;  %v503_v10 = vadd.f32 %v715_v48, %v502_v8 }
 0x10e   : > { %582 = vst [vmem:[%s1137_s22 + $0x8] sm:$0xff] %v508_v6 }
 0x10f   : > { %581 = vst [vmem:[%s1137_s22] sm:$0xff] %v503_v10  ;;  %v728_v11 = vpop.f32.mrb[10].mxu0  ;;  %v806_v12 = vpop.f32.mrb[10].mxu1 }
 0x110   : > { %v518_v13 = vadd.f32 %v806_v12, %v724_v2  ;;  %v729_v14 = vpop.f32.mrb[11].mxu0  ;;  %v512_v15 = vpop.f32.mrb[11].mxu1 }
 0x111   : > { %v730_v16 = vadd.f32 %v729_v14, %v728_v11  ;;  %v513_v17 = vadd.f32 %v721_v60, %v512_v15 }
 0x112   : > { %584 = vst [vmem:[%s1137_s22 + $0x18] sm:$0xff] %v518_v13 }
 0x113   : > { %583 = vst [vmem:[%s1137_s22 + $0x10] sm:$0xff] %v513_v17  ;;  %v731_v18 = vpop.f32.mrb[12].mxu0  ;;  %v809_v19 = vpop.f32.mrb[12].mxu1 }
 0x114   : > { %v528_v20 = vadd.f32 %v809_v19, %v730_v16  ;;  %v732_v21 = vpop.f32.mrb[13].mxu0  ;;  %v522_v22 = vpop.f32.mrb[13].mxu1 }
 0x115   : > { %v733_v23 = vadd.f32 %v732_v21, %v731_v18  ;;  %v523_v24 = vadd.f32 %v727_v9, %v522_v22 }
 0x116   : > { %586 = vst [vmem:[%s1137_s22 + $0x28] sm:$0xff] %v528_v20 }
 0x117   : > { %585 = vst [vmem:[%s1137_s22 + $0x20] sm:$0xff] %v523_v24  ;;  %v734_v25 = vpop.f32.mrb[14].mxu0  ;;  %v812_v26 = vpop.f32.mrb[14].mxu1 }
 0x118   : > { %v735_v27 = vpop.f32.mrb[15].mxu0  ;;  %v532_v28 = vpop.f32.mrb[15].mxu1 }
 0x119   : > { %v736_v29 = vadd.f32 %v735_v27, %v734_v25  ;;  %v533_v30 = vadd.f32 %v733_v23, %v532_v28 }
 0x11b   : > { %v538_v31 = vadd.f32 %v812_v26, %v736_v29  ;;  %587 = vst [vmem:[%s1137_s22 + $0x30] sm:$0xff] %v533_v30  ;;  %v737_v32 = vpop.f32.mrb[16].mxu0  ;;  %v815_v33 = vpop.f32.mrb[16].mxu1 }
 0x11c   : > { %v738_v34 = vpop.f32.mrb[17].mxu0  ;;  %v542_v35 = vpop.f32.mrb[17].mxu1 }
 0x11d   : > { %588 = vst [vmem:[%s1137_s22 + $0x38] sm:$0xff] %v538_v31  ;;  %v739_v36 = vadd.f32 %v738_v34, %v737_v32 }
 0x11f   : > { %v543_v37 = vadd.f32 %v739_v36, %v542_v35  ;;  %v740_v38 = vpop.f32.mrb[18].mxu0  ;;  %v818_v39 = vpop.f32.mrb[18].mxu1 }
 0x120   : > { %v741_v40 = vpop.f32.mrb[19].mxu0  ;;  %v552_v41 = vpop.f32.mrb[19].mxu1 }
 0x121   : > { %589 = vst [vmem:[%s1137_s22 + $0x40] sm:$0xff] %v543_v37  ;;  %v742_v42 = vadd.f32 %v741_v40, %v740_v38 }
 0x123   : > { %v548_v43 = vadd.f32 %v815_v33, %v742_v42  ;;  %v743_v44 = vpop.f32.mrb[20].mxu0  ;;  %v821_v45 = vpop.f32.mrb[20].mxu1 }
 0x124   : > { %v568_v46 = vadd.f32 %v821_v45, %v1127_v55  ;;  %v744_v47 = vpop.f32.mrb[21].mxu0  ;;  %v562_v48 = vpop.f32.mrb[21].mxu1 }
 0x125   : > { %590 = vst [vmem:[%s1137_s22 + $0x48] sm:$0xff] %v548_v43  ;;  %v745_v50 = vadd.f32 %v744_v47, %v743_v44  ;;  %v563_v51 = vadd.f32 %v1125_v49, %v562_v48 }
 0x126   : > { %594 = vst [vmem:[%s1137_s22 + $0x68] sm:$0xff] %v568_v46 }
 0x127   : > { %v553_v52 = vadd.f32 %v745_v50, %v552_v41  ;;  %593 = vst [vmem:[%s1137_s22 + $0x60] sm:$0xff] %v563_v51  ;;  %v746_v53 = vpop.f32.mrb[22].mxu0  ;;  %v824_v54 = vpop.f32.mrb[22].mxu1 }
 0x128   : > { %v578_v56 = vadd.f32 %v824_v54, %v1132_v3  ;;  %v747_v57 = vpop.f32.mrb[23].mxu0  ;;  %v572_v58 = vpop.f32.mrb[23].mxu1 }
 0x129   : > { %591 = vst [vmem:[%s1137_s22 + $0x50] sm:$0xff] %v553_v52  ;;  %v748_v55 = vadd.f32 %v747_v57, %v746_v53  ;;  %v573_v59 = vadd.f32 %v1129_v61, %v572_v58 }
 0x12a   : > { %596 = vst [vmem:[%s1137_s22 + $0x78] sm:$0xff] %v578_v56 }
 0x12b   : > { %v558_v60 = vadd.f32 %v818_v39, %v748_v55  ;;  %595 = vst [vmem:[%s1137_s22 + $0x70] sm:$0xff] %v573_v59 }
 0x12d   : > { %592 = vst [vmem:[%s1137_s22 + $0x58] sm:$0xff] %v558_v60 }
 0x12e PF: > { %s12_s9 = sadd.s32 1, %s907_s9  }
 0x12f   : > { %p9_p4 = scmp.ge.s32.totalorder %s12_s9, 6  }
 0x131   :  { %11 = sbr.rel (!%p9_p4) target bundleno = 1 (0x1), region = 58 }

</bundles_post_ra>
